<compile_context>
chip_gen: v7x
topology: tpu7x:2x2x1
jax: 0.10.0
libtpu: 0.0.40
codegen_flags: <defaults>
</compile_context>

<pallas_src>
import functools

import jax
import jax.numpy as jnp
from jax.experimental import pallas as pl
from jax.experimental.pallas import tpu as pltpu

_SQRT1_2 = 0.7071067811865476


def _gelu(x):
    """erf-based GELU (matches torch.nn.functional.gelu default).

    Abramowitz & Stegun 7.1.26 erf approximation (|err| < 1.5e-7).  The
    1/(1+p*z) term uses the EUP approximate reciprocal plus one Newton step:
    ~float32 accuracy while the divide leaves the (critical) VALU slot.
    """
    a1, a2, a3, a4, a5 = (0.254829592, -0.284496736, 1.421413741,
                          -1.453152027, 1.061405429)
    p = 0.3275911
    z = jnp.abs(x) * _SQRT1_2
    den = 1.0 + p * z
    t = pl.reciprocal(den, approx=True)      # EUP slot
    t = t * (2.0 - den * t)                  # one Newton step -> ~exact f32
    poly = ((((a5 * t + a4) * t + a3) * t + a2) * t + a1) * t
    erf = 1.0 - poly * jnp.exp(-z * z)       # exp on the EUP
    erf = jnp.where(x >= 0.0, erf, -erf)
    return 0.5 * x * (1.0 + erf)


def _feedforward_kernel(x_ref, w1_ref, wdm_ref, w2_ref, o_ref, *, H, W,
                        images_per_block):
    """One grid step = images_per_block images; inner loop = one image."""
    HW = H * W
    w1 = w1_ref[...]                          # (Cm, C)
    w2 = w2_ref[...]                          # (Cout, Cm)

    def tap(h1, k, d):
        # tap[:, p] = h1[:, p + d] (the (dy,dx) neighbour); taps that fall
        # outside the image are zeroed because wdm[k] already carries the
        # zero-padding border mask.
        return wdm_ref[k] * pltpu.roll(h1, shift=(-d) % HW, axis=1)

    def one_image(i, carry):
        base = pl.multiple_of(i * HW, HW)
        x = x_ref[:, pl.ds(base, HW)]                                # (C, HW)

        # ---- 1x1 conv C -> Cm on the MXU (idle slot), then GELU ----
        h1 = _gelu(jnp.dot(w1, x, preferred_element_type=jnp.float32))

        # ---- depthwise 3x3, padding=1, groups=Cm: rolls + pre-masked weights,
        #      accumulated in 3 independent chains (VALU co-issue) ----
        a0 = wdm_ref[4] * h1                        # center tap, no roll
        a0 = a0 + tap(h1, 0, -W - 1)
        a0 = a0 + tap(h1, 8, W + 1)
        a1 = tap(h1, 1, -W)
        a1 = a1 + tap(h1, 3, -1)
        a1 = a1 + tap(h1, 5, 1)
        a2 = tap(h1, 7, W)
        a2 = a2 + tap(h1, 2, -W + 1)
        a2 = a2 + tap(h1, 6, W - 1)
        h2 = _gelu((a0 + a1) + a2)                                   # (Cm, HW)

        # ---- 1x1 conv Cm -> Cout on the MXU; lane-dense unmasked store ----
        o_ref[:, pl.ds(base, HW)] = jnp.dot(
            w2, h2, preferred_element_type=jnp.float32)
        return carry

    jax.lax.fori_loop(0, images_per_block, one_image, 0)


def _masked_tap_weights(wd, H, W):
    """Fold the 3x3 zero-padding border masks into per-tap weight planes.

    wd: (Cm, 9), row-major over (ky, kx) (torch depthwise weight reshaped).
    Returns (9, Cm, H*W) f32: plane k is wd[:, k] broadcast over positions and
    zeroed wherever tap k falls outside the image (reproduces padding=1).
    """
    HW = H * W
    pos = jnp.arange(HW, dtype=jnp.int32)
    row, col = pos // W, pos % W
    masks = []
    for dy in (-1, 0, 1):
        for dx in (-1, 0, 1):
            m = jnp.ones((HW,), jnp.bool_)
            if dy == -1:
                m = m & (row >= 1)
            elif dy == 1:
                m = m & (row <= H - 2)
            if dx == -1:
                m = m & (col >= 1)
            elif dx == 1:
                m = m & (col <= W - 2)
            masks.append(m)
    maskf = jnp.stack(masks).astype(jnp.float32)                    # (9, HW)
    return jnp.transpose(wd[:, :, None] * maskf[None, :, :], (1, 0, 2))


def _pick_images_per_block(B, HW, target_lanes=8192):
    """Largest divisor of B with ipb*HW <= target_lanes lanes per block, while
    keeping >= 2 grid steps (v7x has 2 TensorCores) whenever B >= 2."""
    best = 1
    for ipb in range(1, B + 1):
        if ipb * HW > target_lanes:
            break
        if B % ipb != 0:
            continue
        if B >= 2 and B // ipb < 2:
            continue
        best = ipb
    return best


def feedforward(x, w1, wd, w2, *, images_per_block=None):
    """x: [B, H, W, C] f32; w1: (Cm, C); wd: (Cm, 9); w2: (Cout, Cm).

    Returns [B, H, W, Cout] f32 (same as torch FeedForward.forward).
    """
    B, H, W, C = x.shape
    Cm = w1.shape[0]
    Cout = w2.shape[0]
    HW = H * W
    assert w1.shape == (Cm, C) and wd.shape == (Cm, 9) and w2.shape == (Cout, Cm)
    assert HW % 128 == 0, "need H*W to be a multiple of 128 (lane-dense images)"
    if images_per_block is None:
        images_per_block = _pick_images_per_block(B, HW)
    assert B % images_per_block == 0
    P = images_per_block * HW
    n_blocks = B // images_per_block

    # Layout plumbing (module contract is NHWC in/out): channels-first with
    # (b, h, w) flattened onto the lane axis.
    xt = jnp.transpose(x, (3, 0, 1, 2)).reshape(C, B * HW)

    # Weight-only precompute: border masks folded into per-tap weight planes so
    # each depthwise tap in the kernel is a mul+add (no selects).  Constant
    # index_map -> fetched into VMEM once per core, reloaded through the vld
    # slot (which has slack).
    wdm = _masked_tap_weights(wd, H, W)                             # (9, Cm, HW)

    kernel = functools.partial(_feedforward_kernel, H=H, W=W,
                               images_per_block=images_per_block)
    out = pl.pallas_call(
        kernel,
        out_shape=jax.ShapeDtypeStruct((Cout, B * HW), jnp.float32),
        grid_spec=pltpu.PrefetchScalarGridSpec(
            num_scalar_prefetch=0,
            grid=(n_blocks,),
            in_specs=[
                pl.BlockSpec((C, P), lambda b: (0, b)),
                pl.BlockSpec((Cm, C), lambda b: (0, 0)),
                pl.BlockSpec((9, Cm, HW), lambda b: (0, 0, 0)),
                pl.BlockSpec((Cout, Cm), lambda b: (0, 0)),
            ],
            out_specs=pl.BlockSpec((Cout, P), lambda b: (0, b)),
        ),
        compiler_params=pltpu.CompilerParams(
            dimension_semantics=("parallel",)),   # v7x: shard blocks over 2 TCs
    )(xt, w1, wdm, w2)
    return jnp.transpose(out.reshape(Cout, B, H, W), (1, 2, 3, 0))


def init_params(key, in_channel, out_channel, mult=4):
    """Deterministic Conv2d-style (kaiming-uniform-like) init, bias=False.

    Weight layouts (torch weights, squeezed/reshaped):
      w1: (Cm, C)     <- nn.Conv2d(C, Cm, 1).weight[:, :, 0, 0]
      wd: (Cm, 9)     <- nn.Conv2d(Cm, Cm, 3, groups=Cm).weight.reshape(Cm, 9)
      w2: (Cout, Cm)  <- nn.Conv2d(Cm, Cout, 1).weight[:, :, 0, 0]
    """
    cm = in_channel * mult
    k1, k2, k3 = jax.random.split(key, 3)
    b1 = 1.0 / (in_channel ** 0.5)
    w1 = jax.random.uniform(k1, (cm, in_channel), jnp.float32, -b1, b1)
    b2 = 1.0 / 3.0
    wd = jax.random.uniform(k2, (cm, 9), jnp.float32, -b2, b2)
    b3 = 1.0 / (cm ** 0.5)
    w2 = jax.random.uniform(k3, (out_channel, cm), jnp.float32, -b3, b3)
    return w1, wd, w2


def _reference(x, w1, wd, w2):
    """Pure-JAX NHWC reference of FeedForward.forward (exact erf GELU)."""
    B, H, W, C = x.shape
    hp = jax.lax.Precision.HIGHEST
    h1 = jax.nn.gelu(jnp.einsum('bhwc,mc->bhwm', x, w1, precision=hp),
                     approximate=False)
    h1p = jnp.pad(h1, ((0, 0), (1, 1), (1, 1), (0, 0)))
    acc = jnp.zeros_like(h1)
    for ky in range(3):
        for kx in range(3):
            acc = acc + h1p[:, ky:ky + H, kx:kx + W, :] * wd[:, ky * 3 + kx]
    h2 = jax.nn.gelu(acc, approximate=False)
    return jnp.einsum('bhwm,om->bhwo', h2, w2, precision=hp)


if __name__ == "__main__":
    key = jax.random.PRNGKey(0)
    kx_, kp_ = jax.random.split(key)
    B, H, W, C = 2, 16, 16, 4          # FeedForward(4, 4, mult=4) -> hidden Cm=16
    out_channel, mult = 4, 4
    x = jax.random.normal(kx_, (B, H, W, C), jnp.float32)
    w1, wd, w2 = init_params(kp_, C, out_channel, mult)

    out = jax.jit(feedforward)(x, w1, wd, w2)
    jax.block_until_ready(out)
    assert out.shape == (B, H, W, out_channel), out.shape

    ref = _reference(x, w1, wd, w2)
    err = float(jnp.max(jnp.abs(out - ref)))
    # Tolerance covers the EUP approx-reciprocal (+Newton) in GELU and MXU f32
    # rounding; observed error is typically ~1e-5, real bugs are O(0.1).
    assert err < 5e-3, f"max abs error vs reference: {err}"
    print("KERNEL_OK")
</pallas_src>

<mosaic_0001>
module attributes {stable_mosaic.version = 11 : i64} {
  func.func @_feedforward_kernel(%arg0: i32, %arg1: memref<4x256xf32, #tpu.memory_space<vmem>>, %arg2: memref<16x4xf32, #tpu.memory_space<vmem>>, %arg3: memref<9x16x256xf32, #tpu.memory_space<vmem>>, %arg4: memref<4x16xf32, #tpu.memory_space<vmem>>, %arg5: memref<4x256xf32, #tpu.memory_space<vmem>>) attributes {dimension_semantics = [#tpu.dimension_semantics<parallel>], iteration_bounds = array<i64: 2>, scalar_prefetch = 0 : i64, scratch_operands = 0 : i64, tpu.core_type = #tpu.core_type<tc>, window_params = [{transform_indices = @transform_0, window_bounds = array<i64: 4, 256>}, {pipeline_mode = #tpu.pipeline_mode<synchronous>, transform_indices = @transform_1, window_bounds = array<i64: 16, 4>}, {pipeline_mode = #tpu.pipeline_mode<synchronous>, transform_indices = @transform_2, window_bounds = array<i64: 9, 16, 256>}, {pipeline_mode = #tpu.pipeline_mode<synchronous>, transform_indices = @transform_3, window_bounds = array<i64: 4, 16>}, {transform_indices = @transform_4, window_bounds = array<i64: 4, 256>}]} {
    %c0 = arith.constant 0 : index
    %c0_0 = arith.constant 0 : index
    %0 = vector.load %arg2[%c0, %c0_0] : memref<16x4xf32, #tpu.memory_space<vmem>>, vector<16x4xf32>
    %c0_1 = arith.constant 0 : index
    %c0_2 = arith.constant 0 : index
    %1 = vector.load %arg4[%c0_1, %c0_2] : memref<4x16xf32, #tpu.memory_space<vmem>>, vector<4x16xf32>
    %c0_i32 = arith.constant 0 : i32
    %c256_i32 = arith.constant 256 : i32
    %2 = arith.muli %c0_i32, %c256_i32 : i32
    %3 = tpu.assume_multiple %2, 256 : i32
    %c0_3 = arith.constant 0 : index
    %4 = arith.index_cast %3 : i32 to index
    %5 = vector.load %arg1[%c0_3, %4] : memref<4x256xf32, #tpu.memory_space<vmem>>, vector<4x256xf32>
    %cst = arith.constant dense<0.000000e+00> : vector<16x256xf32>
    %6 = tpu.matmul %0, %5, %cst {dimension_numbers = #tpu.dot_dimension_numbers<[1], [0], [0], [1], [0, 0, 1, 1], [], []>} : vector<16x4xf32>, vector<4x256xf32>, vector<16x256xf32> -> vector<16x256xf32>
    %7 = math.absf %6 : vector<16x256xf32>
    %cst_4 = arith.constant 0.707106769 : f32
    %8 = vector.broadcast %cst_4 : f32 to vector<16x256xf32>
    %9 = arith.mulf %7, %8 : vector<16x256xf32>
    %cst_5 = arith.constant 0.327591091 : f32
    %10 = vector.broadcast %cst_5 : f32 to vector<16x256xf32>
    %11 = arith.mulf %10, %9 : vector<16x256xf32>
    %cst_6 = arith.constant 1.000000e+00 : f32
    %12 = vector.broadcast %cst_6 : f32 to vector<16x256xf32>
    %13 = arith.addf %12, %11 : vector<16x256xf32>
    %14 = tpu.reciprocal %13 {approx = true} : vector<16x256xf32> -> vector<16x256xf32>
    %15 = arith.mulf %13, %14 : vector<16x256xf32>
    %cst_7 = arith.constant 2.000000e+00 : f32
    %16 = vector.broadcast %cst_7 : f32 to vector<16x256xf32>
    %17 = arith.subf %16, %15 : vector<16x256xf32>
    %18 = arith.mulf %14, %17 : vector<16x256xf32>
    %cst_8 = arith.constant 1.06140542 : f32
    %19 = vector.broadcast %cst_8 : f32 to vector<16x256xf32>
    %20 = arith.mulf %19, %18 : vector<16x256xf32>
    %cst_9 = arith.constant -1.45315206 : f32
    %21 = vector.broadcast %cst_9 : f32 to vector<16x256xf32>
    %22 = arith.addf %20, %21 : vector<16x256xf32>
    %23 = arith.mulf %22, %18 : vector<16x256xf32>
    %cst_10 = arith.constant 1.42141378 : f32
    %24 = vector.broadcast %cst_10 : f32 to vector<16x256xf32>
    %25 = arith.addf %23, %24 : vector<16x256xf32>
    %26 = arith.mulf %25, %18 : vector<16x256xf32>
    %cst_11 = arith.constant -0.284496725 : f32
    %27 = vector.broadcast %cst_11 : f32 to vector<16x256xf32>
    %28 = arith.addf %26, %27 : vector<16x256xf32>
    %29 = arith.mulf %28, %18 : vector<16x256xf32>
    %cst_12 = arith.constant 0.254829586 : f32
    %30 = vector.broadcast %cst_12 : f32 to vector<16x256xf32>
    %31 = arith.addf %29, %30 : vector<16x256xf32>
    %32 = arith.mulf %31, %18 : vector<16x256xf32>
    %cst_13 = arith.constant 0.000000e+00 : f32
    %33 = vector.broadcast %cst_13 : f32 to vector<16x256xf32>
    %34 = arith.subf %33, %9 : vector<16x256xf32>
    %35 = arith.mulf %34, %9 : vector<16x256xf32>
    %36 = math.exp %35 : vector<16x256xf32>
    %37 = arith.mulf %32, %36 : vector<16x256xf32>
    %cst_14 = arith.constant 1.000000e+00 : f32
    %38 = vector.broadcast %cst_14 : f32 to vector<16x256xf32>
    %39 = arith.subf %38, %37 : vector<16x256xf32>
    %cst_15 = arith.constant 0.000000e+00 : f32
    %40 = vector.broadcast %cst_15 : f32 to vector<16x256xf32>
    %41 = arith.cmpf oge, %6, %40 : vector<16x256xf32>
    %cst_16 = arith.constant 0.000000e+00 : f32
    %42 = vector.broadcast %cst_16 : f32 to vector<16x256xf32>
    %43 = arith.subf %42, %39 : vector<16x256xf32>
    %44 = arith.select %41, %39, %43 : vector<16x256xi1>, vector<16x256xf32>
    %cst_17 = arith.constant 5.000000e-01 : f32
    %45 = vector.broadcast %cst_17 : f32 to vector<16x256xf32>
    %46 = arith.mulf %45, %6 : vector<16x256xf32>
    %cst_18 = arith.constant 1.000000e+00 : f32
    %47 = vector.broadcast %cst_18 : f32 to vector<16x256xf32>
    %48 = arith.addf %47, %44 : vector<16x256xf32>
    %49 = arith.mulf %46, %48 : vector<16x256xf32>
    %c4 = arith.constant 4 : index
    %c0_19 = arith.constant 0 : index
    %c0_20 = arith.constant 0 : index
    %50 = vector.load %arg3[%c4, %c0_19, %c0_20] : memref<9x16x256xf32, #tpu.memory_space<vmem>>, vector<1x16x256xf32>
    %51 = vector.shape_cast %50 : vector<1x16x256xf32> to vector<16x256xf32>
    %52 = arith.mulf %51, %49 : vector<16x256xf32>
    %c0_21 = arith.constant 0 : index
    %c0_22 = arith.constant 0 : index
    %c0_23 = arith.constant 0 : index
    %53 = vector.load %arg3[%c0_21, %c0_22, %c0_23] : memref<9x16x256xf32, #tpu.memory_space<vmem>>, vector<1x16x256xf32>
    %54 = vector.shape_cast %53 : vector<1x16x256xf32> to vector<16x256xf32>
    %c17_i32 = arith.constant 17 : i32
    %55 = tpu.dynamic_rotate %49 by %c17_i32 dim 1 : vector<16x256xf32>, i32 -> vector<16x256xf32>
    %56 = arith.mulf %54, %55 : vector<16x256xf32>
    %57 = arith.addf %52, %56 : vector<16x256xf32>
    %c8 = arith.constant 8 : index
    %c0_24 = arith.constant 0 : index
    %c0_25 = arith.constant 0 : index
    %58 = vector.load %arg3[%c8, %c0_24, %c0_25] : memref<9x16x256xf32, #tpu.memory_space<vmem>>, vector<1x16x256xf32>
    %59 = vector.shape_cast %58 : vector<1x16x256xf32> to vector<16x256xf32>
    %c239_i32 = arith.constant 239 : i32
    %60 = tpu.dynamic_rotate %49 by %c239_i32 dim 1 : vector<16x256xf32>, i32 -> vector<16x256xf32>
    %61 = arith.mulf %59, %60 : vector<16x256xf32>
    %62 = arith.addf %57, %61 : vector<16x256xf32>
    %c1 = arith.constant 1 : index
    %c0_26 = arith.constant 0 : index
    %c0_27 = arith.constant 0 : index
    %63 = vector.load %arg3[%c1, %c0_26, %c0_27] : memref<9x16x256xf32, #tpu.memory_space<vmem>>, vector<1x16x256xf32>
    %64 = vector.shape_cast %63 : vector<1x16x256xf32> to vector<16x256xf32>
    %c16_i32 = arith.constant 16 : i32
    %65 = tpu.dynamic_rotate %49 by %c16_i32 dim 1 : vector<16x256xf32>, i32 -> vector<16x256xf32>
    %66 = arith.mulf %64, %65 : vector<16x256xf32>
    %c3 = arith.constant 3 : index
    %c0_28 = arith.constant 0 : index
    %c0_29 = arith.constant 0 : index
    %67 = vector.load %arg3[%c3, %c0_28, %c0_29] : memref<9x16x256xf32, #tpu.memory_space<vmem>>, vector<1x16x256xf32>
    %68 = vector.shape_cast %67 : vector<1x16x256xf32> to vector<16x256xf32>
    %c1_i32 = arith.constant 1 : i32
    %69 = tpu.dynamic_rotate %49 by %c1_i32 dim 1 : vector<16x256xf32>, i32 -> vector<16x256xf32>
    %70 = arith.mulf %68, %69 : vector<16x256xf32>
    %71 = arith.addf %66, %70 : vector<16x256xf32>
    %c5 = arith.constant 5 : index
    %c0_30 = arith.constant 0 : index
    %c0_31 = arith.constant 0 : index
    %72 = vector.load %arg3[%c5, %c0_30, %c0_31] : memref<9x16x256xf32, #tpu.memory_space<vmem>>, vector<1x16x256xf32>
    %73 = vector.shape_cast %72 : vector<1x16x256xf32> to vector<16x256xf32>
    %c255_i32 = arith.constant 255 : i32
    %74 = tpu.dynamic_rotate %49 by %c255_i32 dim 1 : vector<16x256xf32>, i32 -> vector<16x256xf32>
    %75 = arith.mulf %73, %74 : vector<16x256xf32>
    %76 = arith.addf %71, %75 : vector<16x256xf32>
    %c7 = arith.constant 7 : index
    %c0_32 = arith.constant 0 : index
    %c0_33 = arith.constant 0 : index
    %77 = vector.load %arg3[%c7, %c0_32, %c0_33] : memref<9x16x256xf32, #tpu.memory_space<vmem>>, vector<1x16x256xf32>
    %78 = vector.shape_cast %77 : vector<1x16x256xf32> to vector<16x256xf32>
    %c240_i32 = arith.constant 240 : i32
    %79 = tpu.dynamic_rotate %49 by %c240_i32 dim 1 : vector<16x256xf32>, i32 -> vector<16x256xf32>
    %80 = arith.mulf %78, %79 : vector<16x256xf32>
    %c2 = arith.constant 2 : index
    %c0_34 = arith.constant 0 : index
    %c0_35 = arith.constant 0 : index
    %81 = vector.load %arg3[%c2, %c0_34, %c0_35] : memref<9x16x256xf32, #tpu.memory_space<vmem>>, vector<1x16x256xf32>
    %82 = vector.shape_cast %81 : vector<1x16x256xf32> to vector<16x256xf32>
    %c15_i32 = arith.constant 15 : i32
    %83 = tpu.dynamic_rotate %49 by %c15_i32 dim 1 : vector<16x256xf32>, i32 -> vector<16x256xf32>
    %84 = arith.mulf %82, %83 : vector<16x256xf32>
    %85 = arith.addf %80, %84 : vector<16x256xf32>
    %c6 = arith.constant 6 : index
    %c0_36 = arith.constant 0 : index
    %c0_37 = arith.constant 0 : index
    %86 = vector.load %arg3[%c6, %c0_36, %c0_37] : memref<9x16x256xf32, #tpu.memory_space<vmem>>, vector<1x16x256xf32>
    %87 = vector.shape_cast %86 : vector<1x16x256xf32> to vector<16x256xf32>
    %c241_i32 = arith.constant 241 : i32
    %88 = tpu.dynamic_rotate %49 by %c241_i32 dim 1 : vector<16x256xf32>, i32 -> vector<16x256xf32>
    %89 = arith.mulf %87, %88 : vector<16x256xf32>
    %90 = arith.addf %85, %89 : vector<16x256xf32>
    %91 = arith.addf %62, %76 : vector<16x256xf32>
    %92 = arith.addf %91, %90 : vector<16x256xf32>
    %93 = math.absf %92 : vector<16x256xf32>
    %cst_38 = arith.constant 0.707106769 : f32
    %94 = vector.broadcast %cst_38 : f32 to vector<16x256xf32>
    %95 = arith.mulf %93, %94 : vector<16x256xf32>
    %cst_39 = arith.constant 0.327591091 : f32
    %96 = vector.broadcast %cst_39 : f32 to vector<16x256xf32>
    %97 = arith.mulf %96, %95 : vector<16x256xf32>
    %cst_40 = arith.constant 1.000000e+00 : f32
    %98 = vector.broadcast %cst_40 : f32 to vector<16x256xf32>
    %99 = arith.addf %98, %97 : vector<16x256xf32>
    %100 = tpu.reciprocal %99 {approx = true} : vector<16x256xf32> -> vector<16x256xf32>
    %101 = arith.mulf %99, %100 : vector<16x256xf32>
    %cst_41 = arith.constant 2.000000e+00 : f32
    %102 = vector.broadcast %cst_41 : f32 to vector<16x256xf32>
    %103 = arith.subf %102, %101 : vector<16x256xf32>
    %104 = arith.mulf %100, %103 : vector<16x256xf32>
    %cst_42 = arith.constant 1.06140542 : f32
    %105 = vector.broadcast %cst_42 : f32 to vector<16x256xf32>
    %106 = arith.mulf %105, %104 : vector<16x256xf32>
    %cst_43 = arith.constant -1.45315206 : f32
    %107 = vector.broadcast %cst_43 : f32 to vector<16x256xf32>
    %108 = arith.addf %106, %107 : vector<16x256xf32>
    %109 = arith.mulf %108, %104 : vector<16x256xf32>
    %cst_44 = arith.constant 1.42141378 : f32
    %110 = vector.broadcast %cst_44 : f32 to vector<16x256xf32>
    %111 = arith.addf %109, %110 : vector<16x256xf32>
    %112 = arith.mulf %111, %104 : vector<16x256xf32>
    %cst_45 = arith.constant -0.284496725 : f32
    %113 = vector.broadcast %cst_45 : f32 to vector<16x256xf32>
    %114 = arith.addf %112, %113 : vector<16x256xf32>
    %115 = arith.mulf %114, %104 : vector<16x256xf32>
    %cst_46 = arith.constant 0.254829586 : f32
    %116 = vector.broadcast %cst_46 : f32 to vector<16x256xf32>
    %117 = arith.addf %115, %116 : vector<16x256xf32>
    %118 = arith.mulf %117, %104 : vector<16x256xf32>
    %cst_47 = arith.constant 0.000000e+00 : f32
    %119 = vector.broadcast %cst_47 : f32 to vector<16x256xf32>
    %120 = arith.subf %119, %95 : vector<16x256xf32>
    %121 = arith.mulf %120, %95 : vector<16x256xf32>
    %122 = math.exp %121 : vector<16x256xf32>
    %123 = arith.mulf %118, %122 : vector<16x256xf32>
    %cst_48 = arith.constant 1.000000e+00 : f32
    %124 = vector.broadcast %cst_48 : f32 to vector<16x256xf32>
    %125 = arith.subf %124, %123 : vector<16x256xf32>
    %cst_49 = arith.constant 0.000000e+00 : f32
    %126 = vector.broadcast %cst_49 : f32 to vector<16x256xf32>
    %127 = arith.cmpf oge, %92, %126 : vector<16x256xf32>
    %cst_50 = arith.constant 0.000000e+00 : f32
    %128 = vector.broadcast %cst_50 : f32 to vector<16x256xf32>
    %129 = arith.subf %128, %125 : vector<16x256xf32>
    %130 = arith.select %127, %125, %129 : vector<16x256xi1>, vector<16x256xf32>
    %cst_51 = arith.constant 5.000000e-01 : f32
    %131 = vector.broadcast %cst_51 : f32 to vector<16x256xf32>
    %132 = arith.mulf %131, %92 : vector<16x256xf32>
    %cst_52 = arith.constant 1.000000e+00 : f32
    %133 = vector.broadcast %cst_52 : f32 to vector<16x256xf32>
    %134 = arith.addf %133, %130 : vector<16x256xf32>
    %135 = arith.mulf %132, %134 : vector<16x256xf32>
    %cst_53 = arith.constant dense<0.000000e+00> : vector<4x256xf32>
    %136 = tpu.matmul %1, %135, %cst_53 {dimension_numbers = #tpu.dot_dimension_numbers<[1], [0], [0], [1], [0, 0, 1, 1], [], []>} : vector<4x16xf32>, vector<16x256xf32>, vector<4x256xf32> -> vector<4x256xf32>
    %c0_54 = arith.constant 0 : index
    %137 = arith.index_cast %3 : i32 to index
    %138 = vector.load %arg5[%c0_54, %137] : memref<4x256xf32, #tpu.memory_space<vmem>>, vector<4x256xf32>
    tpu.vector_store %arg5[%c0_54, %137], %136 {strides = array<i32>} : memref<4x256xf32, #tpu.memory_space<vmem>>, vector<4x256xf32>,
    %c1_i32_55 = arith.constant 1 : i32
    return
  }
  func.func @transform_0(%arg0: i32) -> (i32, i32) {
    %c0_i32 = arith.constant 0 : i32
    %c0_i32_0 = arith.constant 0 : i32
    return %c0_i32, %arg0 : i32, i32
  }
  func.func @transform_1(%arg0: i32) -> (i32, i32) {
    %c0_i32 = arith.constant 0 : i32
    %c0_i32_0 = arith.constant 0 : i32
    %c0_i32_1 = arith.constant 0 : i32
    return %c0_i32, %c0_i32_0 : i32, i32
  }
  func.func @transform_2(%arg0: i32) -> (i32, i32, i32) {
    %c0_i32 = arith.constant 0 : i32
    %c0_i32_0 = arith.constant 0 : i32
    %c0_i32_1 = arith.constant 0 : i32
    %c0_i32_2 = arith.constant 0 : i32
    return %c0_i32, %c0_i32_0, %c0_i32_1 : i32, i32, i32
  }
  func.func @transform_3(%arg0: i32) -> (i32, i32) {
    %c0_i32 = arith.constant 0 : i32
    %c0_i32_0 = arith.constant 0 : i32
    %c0_i32_1 = arith.constant 0 : i32
    return %c0_i32, %c0_i32_0 : i32, i32
  }
  func.func @transform_4(%arg0: i32) -> (i32, i32) {
    %c0_i32 = arith.constant 0 : i32
    %c0_i32_0 = arith.constant 0 : i32
    return %c0_i32, %arg0 : i32, i32
  }
}

</mosaic_0001>

<bundles_post_ra>
// kernel: feedforward.1
= control target key start
LH: loop header
LB: loop body
LE: loop exit
PB: predicated region body
PF: predicated region fallthrough
CT: control target
= control target key end

     0   :  { %s1026_s15 = smov 0   ;;  %s1399_s0 = inlined_call_operand.vmem [shape: f32[4,512], index: 0, kind: input, shape index: {}]   ;;  %s1400_s1 = inlined_call_operand.vmem [shape: f32[16,4], index: 1, kind: input, shape index: {}]   ;;  %s1401_s2 = inlined_call_operand.vmem [shape: f32[9,16,256], index: 2, kind: input, shape index: {}]   ;;  %s1402_s3 = inlined_call_operand.vmem [shape: f32[4,16], index: 3, kind: input, shape index: {}]   ;;  %s1403_s4 = inlined_call_operand.vmem [shape: f32[4,512], index: 4, kind: output, shape index: {}]  }
   0x1 LB: > { %s882_s16 = sadd.s32 4294967295, %s990_s15   ;;  %p886_p0 = scmp.ge.s32.totalorder %s990_s15, 1  ;;  %s990_s15 = sphi %s1026_s15, %s14_s15  }
   0x2   : > { %p163_p1 = scmp.lt.s32.totalorder %s990_s15, 3 }
   0x4   : > { %p164_p2 = pnand %p886_p0, %p163_p1 }
   0x5   : > { %s887_s17 = sshll.u32 (!%p164_p2), %s882_s16, 1  ;;  %v992_v0 = vmov (!%p164_p2), 0.0   ;;  %vm214_vm0 = vcmask (!%p164_p2), 1043456   ;;  %v201_v3 = vld [vmem:[%s1400_s1] sm:$0xff] (!%p164_p2)  ;;  %vm207_vm1 = vcmask (!%p164_p2), 31744   ;;  %v202_v4 = vld [vmem:[%s1400_s1 + $0x8] sm:$0xff] (!%p164_p2) }
   0x6   : > { %167 = sbr.rel (%p164_p2) target bundleno = 748 (0x2ec), region = 36  ;;  %p190_p3 = scmp.lt.s32.totalorder (!%p164_p2), %s887_s17, 3  ;;  %283 = vmatprep.mubr.f32.mxu0 (!%p164_p2), %v992_v0  ;;  %814 = vmatprep.mubr.f32.mxu1 (!%p164_p2), %v992_v0 }
   0x7   : > { %s993_s26 = smov (!%p164_p2), 17   ;;  %s994_s27 = smov (!%p164_p2), 16  }
   0x8   : > { %s995_s28 = smov (!%p164_p2), 1   ;;  %s996_s29 = smov (!%p164_p2), 111  }
   0x9   : > { %s997_s30 = smov (!%p164_p2), 127   ;;  %s998_s5 = smov (!%p164_p2), 112  }
   0xa   : > { %s999_s6 = smov (!%p164_p2), 15   ;;  %s1000_s7 = smov (!%p164_p2), 113  }
   0xd   : > { %s1405_s17 = smov (!%p190_p3, %s887_s17), 3 }
   0xe   : > { %s888_s18 = sshll.u32 %s1405_s17, 2 }
   0xf   : > { %s193_s21 = scalar_lea.vmem %s1399_s0, %s888_s18  ;;  %s199_s16 = scalar_lea.vmem %s1403_s4, %s888_s18 }
  0x10   : > { %v204_v1 = vld [vmem:[%s193_s21] sm:$0xff] }
  0x11   : > { %v206_v2 = vcombine.high %v204_v1, %v204_v1 }
  0x13   : > { %891 = vmatprep.subr.msk.mxu0 %vm214_vm0, %v206_v2 }
  0x14   : > { %892 = vmatpush1.msk.msra.mxu0 %vm214_vm0, %v204_v1 }
  0x15   : > { %893 = vmatmul.mubr.msk.f32.vlgmr.msra.gmra.mrb[0].mxu0 %vm207_vm1, %v201_v3 }
  0x16   : > { %289 = vmatprep.mubr.f32.mxu0 %v992_v0 }
  0x19   : > { %894 = vmatmul.mubr.msk.f32.gmra.mrb[2].mxu0 %vm207_vm1, %v202_v4 }
  0xe8   : > { %v1048_v5 = vpop.f32.mrb[0].mxu0 }
  0xe9   : > { %v296_v6 = vand.u32 2147483647, %v1048_v5  ;;  %v1051_v7 = vpop.f32.mrb[1].mxu0  ;;  %vm388_vm2 = vcmp.ge.f32.partialorder %v1048_v5, 0.0 }
  0xea   : > { %v297_v8 = vand.u32 2147483647, %v1051_v7  ;;  %vm389_vm3 = vcmp.ge.f32.partialorder %v1051_v7, 0.0 }
  0xeb   : > { %v300_v9 = vmul.f32 0.70710677, %v296_v6 }
  0xec   : > { %v301_v10 = vmul.f32 0.70710677, %v297_v8  ;;  %v1054_v11 = vpop.f32.mrb[2].mxu0 }
  0xed   : > { %v304_v12 = vmul.f32 0.3275911, %v300_v9  ;;  %v298_v13 = vand.u32 2147483647, %v1054_v11  ;;  %v1057_v15 = vpop.f32.mrb[3].mxu0  ;;  %v364_v28 = vsub.f32 0.0, %v300_v9 }
  0xee   : > { %v305_v14 = vmul.f32 0.3275911, %v301_v10  ;;  %v299_v18 = vand.u32 2147483647, %v1057_v15  ;;  %v365_v31 = vsub.f32 0.0, %v301_v10  ;;  %vm390_vm4 = vcmp.ge.f32.partialorder %v1054_v11, 0.0 }
  0xef   : > { %v308_v16 = vadd.f32 1.0, %v304_v12  ;;  %v302_v17 = vmul.f32 0.70710677, %v298_v13  ;;  %v368_v36 = vmul.f32 %v364_v28, %v300_v9  ;;  %vm391_vm5 = vcmp.ge.f32.partialorder %v1057_v15, 0.0 }
  0xf0   : > { %v309_v19 = vadd.f32 1.0, %v305_v14  ;;  %v1060_v21 = vmul.f32 0.70710677, %v299_v18  ;;  %v369_v41 = vmul.f32 %v365_v31, %v301_v10 }
  0xf1   : > { %952 = vrcp.f32 %v308_v16  ;;  %v306_v20 = vmul.f32 0.3275911, %v302_v17  ;;  %v366_v38 = vsub.f32 0.0, %v302_v17  ;;  %v372_v47 = vmul.f32 1.442695, %v368_v36 }
  0xf2   : > { %954 = vrcp.f32 %v309_v19  ;;  %v307_v23 = vmul.f32 0.3275911, %v1060_v21  ;;  %v374_v52 = vmul.f32 1.442695, %v369_v41  ;;  %v401_v41 = vmul.f32 0.5, %v1051_v7 }
  0xf3   : > { %v310_v22 = vadd.f32 1.0, %v306_v20  ;;  %v370_v49 = vmul.f32 %v366_v38, %v302_v17 }
  0xf4   : > { %v311_v24 = vadd.f32 1.0, %v307_v23 }
  0xf5   : > { %956 = vrcp.f32 %v310_v22  ;;  %v376_v59 = vmul.f32 1.442695, %v370_v49 }
  0xf6   : > { %958 = vrcp.f32 %v311_v24 }
  0xf7   : > { %960 = vpow2.f32 %v372_v47  ;;  %v402_v47 = vmul.f32 0.5, %v1054_v11 }
  0xf8   : > { %962 = vpow2.f32 %v374_v52 }
  0xf9   : > { %964 = vpow2.f32 %v376_v59 }
  0xfb   : > { %v953_v25 = vpop.eup %952 }
  0xfc   : > { %v955_v26 = vpop.eup %954  ;;  %v316_v27 = vmul.f32 %v953_v25, %v308_v16 }
  0xfd   : > { %v317_v29 = vmul.f32 %v955_v26, %v309_v19 }
  0xfe   : > { %v320_v30 = vsub.f32 2.0, %v316_v27 }
  0xff   : > { %v957_v32 = vpop.eup %956  ;;  %v321_v33 = vsub.f32 2.0, %v317_v29 }
 0x100   : > { %v324_v34 = vmul.f32 %v953_v25, %v320_v30  ;;  %v318_v35 = vmul.f32 %v957_v32, %v310_v22  ;;  %v959_v39 = vpop.eup %958 }
 0x101   : > { %v325_v37 = vmul.f32 %v955_v26, %v321_v33  ;;  %v319_v44 = vmul.f32 %v959_v39, %v311_v24  ;;  %v961_v17 = vpop.eup %960  ;;  %v367_v24 = vsub.f32 0.0, %v1060_v21 }
 0x102   : > { %v328_v40 = vmul.f32 1.0614054, %v324_v34  ;;  %v322_v42 = vsub.f32 2.0, %v318_v35  ;;  %v963_v20 = vpop.eup %962 }
 0x103   : > { %v329_v43 = vmul.f32 1.0614054, %v325_v37  ;;  %v323_v50 = vsub.f32 2.0, %v319_v44  ;;  %v965_v28 = vpop.eup %964  ;;  %v371_v33 = vmul.f32 %v367_v24, %v1060_v21  ;;  %v898_v24 = vld [vmem:[%s1401_s2 + $0x98] sm:$0xff] }
 0x104   : > { %v332_v45 = vadd.f32 -1.4531521, %v328_v40  ;;  %v326_v46 = vmul.f32 %v957_v32, %v322_v42 }
 0x105   : > { %v333_v48 = vadd.f32 -1.4531521, %v329_v43  ;;  %v1063_v55 = vmul.f32 %v959_v39, %v323_v50  ;;  %v378_v44 = vmul.f32 1.442695, %v371_v33 }
 0x106   : > { %v336_v51 = vmul.f32 %v332_v45, %v324_v34  ;;  %v330_v53 = vmul.f32 1.0614054, %v326_v46 }
 0x107   : > { %v337_v54 = vmul.f32 %v333_v48, %v325_v37  ;;  %v331_v60 = vmul.f32 1.0614054, %v1063_v55  ;;  %966 = vpow2.f32 %v378_v44  ;;  %v911_v44 = vld [vmem:[%s1401_s2 + $0xa0] sm:$0xff] }
 0x108   : > { %v340_v56 = vadd.f32 1.4214138, %v336_v51  ;;  %v334_v57 = vadd.f32 -1.4531521, %v330_v53 }
 0x109   : > { %v341_v58 = vadd.f32 1.4214138, %v337_v54  ;;  %v335_v0 = vadd.f32 -1.4531521, %v331_v60 }
 0x10a   : > { %v344_v61 = vmul.f32 %v340_v56, %v324_v34  ;;  %v338_v62 = vmul.f32 %v334_v57, %v326_v46  ;;  %v403_v56 = vmul.f32 0.5, %v1057_v15 }
 0x10b   : > { %v345_v63 = vmul.f32 %v341_v58, %v325_v37  ;;  %v339_v9 = vmul.f32 %v335_v0, %v1063_v55 }
 0x10c   : > { %v348_v1 = vadd.f32 -0.28449672, %v344_v61  ;;  %v342_v2 = vadd.f32 1.4214138, %v338_v62 }
 0x10d   : > { %v349_v3 = vadd.f32 -0.28449672, %v345_v63  ;;  %v343_v19 = vadd.f32 1.4214138, %v339_v9 }
 0x10e   : > { %v352_v4 = vmul.f32 %v348_v1, %v324_v34  ;;  %v346_v6 = vmul.f32 %v342_v2, %v326_v46 }
 0x10f   : > { %v353_v8 = vmul.f32 %v349_v3, %v325_v37  ;;  %v347_v30 = vmul.f32 %v343_v19, %v1063_v55  ;;  %v895_v19 = vld [vmem:[%s1401_s2 + $0x80] sm:$0xff] }
 0x110   : > { %v356_v10 = vadd.f32 0.2548296, %v352_v4  ;;  %v350_v12 = vadd.f32 -0.28449672, %v346_v6 }
 0x111   : > { %v357_v13 = vadd.f32 0.2548296, %v353_v8  ;;  %v351_v40 = vadd.f32 -0.28449672, %v347_v30  ;;  %v967_v50 = vpop.eup %966 }
 0x112   : > { %v360_v14 = vmul.f32 %v356_v10, %v324_v34  ;;  %v354_v16 = vmul.f32 %v350_v12, %v326_v46  ;;  %v433_v12 = vlaneseq }
 0x113   : > { %v361_v18 = vmul.f32 %v357_v13, %v325_v37  ;;  %v400_v37 = vmul.f32 0.5, %v1048_v5  ;;  %v355_v5 = vmul.f32 %v351_v40, %v1063_v55 }
 0x114   : > { %v380_v22 = vmul.f32 %v961_v17, %v360_v14  ;;  %v358_v23 = vadd.f32 0.2548296, %v354_v16  ;;  %v1154_v16 = vand.u32 127, %v433_v12 }
 0x115   : > { %v381_v25 = vmul.f32 %v963_v20, %v361_v18  ;;  %v359_v49 = vadd.f32 0.2548296, %v355_v5  ;;  %v896_v20 = vld [vmem:[%s1401_s2 + $0x88] sm:$0xff] }
 0x116   : > { %v384_v26 = vsub.f32 1.0, %v380_v22  ;;  %v362_v27 = vmul.f32 %v358_v23, %v326_v46  ;;  %vm435_vm6 = vcmp.lt.s32.totalorder %v1154_v16, 17  ;;  %vm509_vm7 = vcmp.lt.s32.totalorder %v1154_v16, 1  ;;  %v897_v23 = vld [vmem:[%s1401_s2 + $0x90] sm:$0xff] }
 0x117   : > { %v385_v29 = vsub.f32 1.0, %v381_v25  ;;  %v363_v11 = vmul.f32 %v359_v49, %v1063_v55  ;;  %vm487_vm8 = vcmp.lt.s32.totalorder %v1154_v16, 16  ;;  %v421_v25 = vld [vmem:[%s1401_s2] sm:$0xff]  ;;  %vm461_vm9 = vcmp.lt.s32.totalorder %v1154_v16, 111 }
 0x118   : > { %v392_v31 = vsub.f32 0.0, %v384_v26  ;;  %v382_v32 = vmul.f32 %v965_v28, %v362_v27  ;;  %vm535_vm10 = vcmp.lt.s32.totalorder %v1154_v16, 127  ;;  %vm561_vm11 = vcmp.lt.s32.totalorder %v1154_v16, 112 }
 0x119   : > { %v393_v34 = vsub.f32 0.0, %v385_v29  ;;  %v383_v51 = vmul.f32 %v967_v50, %v363_v11  ;;  %vm583_vm12 = vcmp.lt.s32.totalorder %v1154_v16, 15  ;;  %vm609_vm13 = vcmp.lt.s32.totalorder %v1154_v16, 113 }
 0x11a   : > { %v396_v35 = vsel %vm388_vm2, %v384_v26, %v392_v31  ;;  %v386_v36 = vsub.f32 1.0, %v382_v32  ;;  %v422_v26 = vld [vmem:[%s1401_s2 + $0x8] sm:$0xff]  ;;  %v907_v32 = vld [vmem:[%s1401_s2 + $0x60] sm:$0xff]  ;;  %vm746_vm2 = vcmask 130048  }
 0x11b   : > { %v404_v38 = vadd.f32 1.0, %v396_v35  ;;  %v397_v39 = vsel %vm389_vm3, %v385_v29, %v393_v34  ;;  %v387_v52 = vsub.f32 1.0, %v383_v51  ;;  %v903_v34 = vld [vmem:[%s1401_s2 + $0x20] sm:$0xff] }
 0x11c   : > { %v405_v42 = vadd.f32 1.0, %v397_v39  ;;  %v394_v43 = vsub.f32 0.0, %v386_v36 }
 0x11d   : > { %v1074_v45 = vmul.f32 %v404_v38, %v400_v37  ;;  %v395_v53 = vsub.f32 0.0, %v387_v52 }
 0x11e   : > { %v1077_v21 = vmul.f32 %v405_v42, %v401_v41  ;;  %v398_v46 = vsel %vm390_vm4, %v386_v36, %v394_v43  ;;  %v908_v36 = vld [vmem:[%s1401_s2 + $0x68] sm:$0xff]  ;;  %v899_v42 = vld [vmem:[%s1401_s2 + $0x100] sm:$0xff] }
 0x11f   : > { %v406_v48 = vadd.f32 1.0, %v398_v46  ;;  %425 = vrot.lane.b32.xlu0 %v1074_v45, %s993_s26  ;;  %v399_v54 = vsel %vm391_vm5, %v387_v52, %v395_v53  ;;  %v417_v30 = vmul.f32 %v895_v19, %v1074_v45  ;;  %v900_v52 = vld [vmem:[%s1401_s2 + $0x108] sm:$0xff] }
 0x120   : > { %429 = vrot.lane.b32.xlu1 %v1077_v21, %s993_s26  ;;  %v407_v55 = vadd.f32 1.0, %v399_v54  ;;  %v418_v31 = vmul.f32 %v896_v20, %v1077_v21  ;;  %v905_v54 = vld [vmem:[%s1401_s2 + $0x30] sm:$0xff] }
 0x121   : > { %v1085_v7 = vmul.f32 %v406_v48, %v402_v47  ;;  %v912_v48 = vld [vmem:[%s1401_s2 + $0xa8] sm:$0xff] }
 0x122   : > { %v1108_v57 = vmul.f32 %v407_v55, %v403_v56  ;;  %v909_v56 = vld [vmem:[%s1401_s2 + $0x70] sm:$0xff] }
 0x123   : > { %479 = vrot.lane.b32.xlu0 %v1074_v45, %s994_s27  ;;  %v1201_v38 = vmul.f32 %v897_v23, %v1085_v7 }
 0x124   : > { %481 = vrot.lane.b32.xlu1 %v1085_v7, %s994_s27  ;;  %v1204_v39 = vmul.f32 %v898_v24, %v1108_v57 }
 0x127   : > { %501 = vrot.lane.b32.xlu0 %v1074_v45, %s995_s28 }
 0x128   : > { %503 = vrot.lane.b32.xlu1 %v1085_v7, %s995_s28 }
 0x12b   : > { %453 = vrot.lane.b32.xlu0 %v1074_v45, %s996_s29 }
 0x12c   : > { %455 = vrot.lane.b32.xlu1 %v1085_v7, %s996_s29 }
 0x12f   : > { %527 = vrot.lane.b32.xlu0 %v1074_v45, %s997_s30 }
 0x130   : > { %529 = vrot.lane.b32.xlu1 %v1085_v7, %s997_s30 }
 0x133   : > { %553 = vrot.lane.b32.xlu0 %v1074_v45, %s998_s5 }
 0x134   : > { %555 = vrot.lane.b32.xlu1 %v1085_v7, %s998_s5 }
 0x137   : > { %575 = vrot.lane.b32.xlu0 %v1074_v45, %s999_s6 }
 0x138   : > { %577 = vrot.lane.b32.xlu1 %v1085_v7, %s999_s6 }
 0x13b   : > { %601 = vrot.lane.b32.xlu0 %v1074_v45, %s1000_s7 }
 0x13c   : > { %603 = vrot.lane.b32.xlu1 %v1085_v7, %s1000_s7 }
 0x13f   : > { %483 = vrot.lane.b32.xlu0 %v1077_v21, %s994_s27 }
 0x140   : > { %431 = vrot.lane.b32.xlu1 %v1108_v57, %s993_s26 }
 0x143   : > { %505 = vrot.lane.b32.xlu0 %v1077_v21, %s995_s28 }
 0x144   : > { %485 = vrot.lane.b32.xlu1 %v1108_v57, %s994_s27 }
 0x147   : > { %457 = vrot.lane.b32.xlu0 %v1077_v21, %s996_s29 }
 0x148   : > { %507 = vrot.lane.b32.xlu1 %v1108_v57, %s995_s28 }
 0x14b   : > { %531 = vrot.lane.b32.xlu0 %v1077_v21, %s997_s30 }
 0x14c   : > { %459 = vrot.lane.b32.xlu1 %v1108_v57, %s996_s29 }
 0x14f   : > { %557 = vrot.lane.b32.xlu0 %v1077_v21, %s998_s5 }
 0x150   : > { %533 = vrot.lane.b32.xlu1 %v1108_v57, %s997_s30 }
 0x153   : > { %579 = vrot.lane.b32.xlu0 %v1077_v21, %s999_s6 }
 0x154   : > { %559 = vrot.lane.b32.xlu1 %v1108_v57, %s998_s5 }
 0x157   : > { %427 = vrot.lane.b32.xlu0 %v1085_v7, %s993_s26 }
 0x158   : > { %581 = vrot.lane.b32.xlu1 %v1108_v57, %s999_s6 }
 0x15b   : > { %605 = vrot.lane.b32.xlu0 %v1077_v21, %s1000_s7  ;;  %v904_v21 = vld [vmem:[%s1401_s2 + $0x28] sm:$0xff] }
 0x15c   : > { %607 = vrot.lane.b32.xlu1 %v1108_v57, %s1000_s7  ;;  %v910_v57 = vld [vmem:[%s1401_s2 + $0x78] sm:$0xff] }
 0x191   : > { %v426_v15 = vpop.permute.xlu0 %425 }
 0x192   : > { %v430_v58 = vpop.permute.xlu1 %429 }
 0x193   : > { %v436_v27 = vsel %vm435_vm6, %v426_v15, %v430_v58  ;;  %v438_v28 = vsel %vm435_vm6, %v430_v58, %v426_v15 }
 0x194   : > { %v440_v40 = vmul.f32 %v438_v28, %v421_v25  ;;  %v441_v41 = vmul.f32 %v436_v27, %v422_v26 }
 0x195   : > { %v480_v59 = vpop.permute.xlu0 %479 }
 0x196   : > { %v1132_v60 = vpop.permute.xlu1 %481  ;;  %v445_v19 = vadd.f32 %v441_v41, %v418_v31  ;;  %v902_v31 = vld [vmem:[%s1401_s2 + $0x118] sm:$0xff] }
 0x199   : > { %v502_v61 = vpop.permute.xlu0 %501 }
 0x19a   : > { %v1134_v62 = vpop.permute.xlu1 %503 }
 0x19d   : > { %v454_v63 = vpop.permute.xlu0 %453 }
 0x19e   : > { %v1136_v0 = vpop.permute.xlu1 %455 }
 0x1a1   : > { %v528_v1 = vpop.permute.xlu0 %527 }
 0x1a2   : > { %v1138_v2 = vpop.permute.xlu1 %529 }
 0x1a5   : > { %v1140_v3 = vpop.permute.xlu0 %553 }
 0x1a6   : > { %v1142_v4 = vpop.permute.xlu1 %555 }
 0x1a9   : > { %v1144_v6 = vpop.permute.xlu0 %575 }
 0x1aa   : > { %v1146_v8 = vpop.permute.xlu1 %577 }
 0x1ad   : > { %v1148_v9 = vpop.permute.xlu0 %601 }
 0x1ae   : > { %v1150_v10 = vpop.permute.xlu1 %603 }
 0x1b1   : > { %v484_v13 = vpop.permute.xlu0 %483 }
 0x1b2   : > { %v1152_v14 = vpop.permute.xlu1 %431  ;;  %v490_v35 = vsel %vm487_vm8, %v484_v13, %v480_v59  ;;  %v488_v46 = vsel %vm487_vm8, %v480_v59, %v484_v13 }
 0x1b3   : > { %v492_v11 = vmul.f32 %v903_v34, %v490_v35  ;;  %v914_v34 = vld [vmem:[%s1401_s2 + $0xb8] sm:$0xff] }
 0x1b5   : > { %v506_v17 = vpop.permute.xlu0 %505 }
 0x1b6   : > { %v486_v18 = vpop.permute.xlu1 %485  ;;  %v512_v33 = vsel %vm509_vm7, %v506_v17, %v502_v61  ;;  %v510_v37 = vsel %vm509_vm7, %v502_v61, %v506_v17  ;;  %v493_v61 = vmul.f32 %v904_v21, %v488_v46  ;;  %v444_v17 = vadd.f32 %v440_v40, %v417_v30 }
 0x1b7   : > { %v514_v47 = vmul.f32 %v907_v32, %v512_v33  ;;  %v515_v50 = vmul.f32 %v908_v36, %v510_v37  ;;  %v491_v51 = vsel %vm487_vm8, %v486_v18, %v1132_v60  ;;  %v913_v33 = vld [vmem:[%s1401_s2 + $0xb0] sm:$0xff] }
 0x1b8   : > { %v494_v24 = vmul.f32 %v905_v54, %v491_v51  ;;  %v424_v51 = vld [vmem:[%s1401_s2 + $0x18] sm:$0xff] }
 0x1b9   : > { %v458_v22 = vpop.permute.xlu0 %457  ;;  %v518_v20 = vadd.f32 %v514_v47, %v492_v11 }
 0x1ba   : > { %v508_v29 = vpop.permute.xlu1 %507  ;;  %v462_v43 = vsel %vm461_vm9, %v454_v63, %v458_v22  ;;  %v464_v53 = vsel %vm461_vm9, %v458_v22, %v454_v63  ;;  %v906_v63 = vld [vmem:[%s1401_s2 + $0x38] sm:$0xff] }
 0x1bb   : > { %v466_v55 = vmul.f32 %v899_v42, %v462_v43  ;;  %v511_v15 = vsel %vm509_vm7, %v1134_v62, %v508_v29  ;;  %v513_v58 = vsel %vm509_vm7, %v508_v29, %v1134_v62  ;;  %v467_v22 = vmul.f32 %v900_v52, %v464_v53  ;;  %v919_v42 = vld [vmem:[%s1401_s2 + $0x40] sm:$0xff]  ;;  %v920_v43 = vld [vmem:[%s1401_s2 + $0x48] sm:$0xff] }
 0x1bc   : > { %v519_v62 = vadd.f32 %v515_v50, %v493_v61  ;;  %v516_v25 = vmul.f32 %v909_v56, %v513_v58  ;;  %v517_v26 = vmul.f32 %v910_v57, %v511_v15 }
 0x1bd   : > { %v532_v45 = vpop.permute.xlu0 %531  ;;  %v470_v28 = vadd.f32 %v466_v55, %v444_v17  ;;  %v471_v40 = vadd.f32 %v467_v22, %v445_v19 }
 0x1be   : > { %v536_v5 = vsel %vm535_vm10, %v528_v1, %v532_v45  ;;  %v538_v7 = vsel %vm535_vm10, %v532_v45, %v528_v1  ;;  %v460_v49 = vpop.permute.xlu1 %459  ;;  %v489_v1 = vsel %vm487_vm8, %v1132_v60, %v486_v18  ;;  %v901_v60 = vld [vmem:[%s1401_s2 + $0x110] sm:$0xff]  ;;  %v520_v21 = vadd.f32 %v516_v25, %v494_v24  ;;  %v924_v24 = vld [vmem:[%s1401_s2 + $0xc8] sm:$0xff] }
 0x1bf   : > { %v540_v59 = vmul.f32 %v911_v44, %v536_v5  ;;  %v541_v12 = vmul.f32 %v912_v48, %v538_v7  ;;  %v495_v27 = vmul.f32 %v906_v63, %v489_v1  ;;  %v463_v18 = vsel %vm461_vm9, %v1136_v0, %v460_v49  ;;  %v916_v48 = vld [vmem:[%s1401_s2 + $0xe8] sm:$0xff]  ;;  %v917_v63 = vld [vmem:[%s1401_s2 + $0xf0] sm:$0xff] }
 0x1c0   : > { %v465_v32 = vsel %vm461_vm9, %v460_v49, %v1136_v0  ;;  %v915_v0 = vld [vmem:[%s1401_s2 + $0xe0] sm:$0xff]  ;;  %v468_v47 = vmul.f32 %v901_v60, %v463_v18 }
 0x1c1   : > { %v558_v13 = vpop.permute.xlu0 %557  ;;  %v544_v29 = vadd.f32 %v540_v59, %v518_v20  ;;  %v545_v30 = vadd.f32 %v541_v12, %v519_v62  ;;  %v521_v46 = vadd.f32 %v517_v26, %v495_v27  ;;  %v469_v49 = vmul.f32 %v902_v31, %v465_v32  ;;  %v923_v62 = vld [vmem:[%s1401_s2 + $0xc0] sm:$0xff]  ;;  %v925_v31 = vld [vmem:[%s1401_s2 + $0xd0] sm:$0xff] }
 0x1c2   : > { %v534_v23 = vpop.permute.xlu1 %533  ;;  %v562_v41 = vsel %vm561_vm11, %v1140_v3, %v558_v13  ;;  %v564_v5 = vsel %vm561_vm11, %v558_v13, %v1140_v3  ;;  %v921_v3 = vld [vmem:[%s1401_s2 + $0x50] sm:$0xff]  ;;  %v922_v13 = vld [vmem:[%s1401_s2 + $0x58] sm:$0xff] }
 0x1c3   : > { %v537_v35 = vsel %vm535_vm10, %v1138_v2, %v534_v23  ;;  %v539_v36 = vsel %vm535_vm10, %v534_v23, %v1138_v2  ;;  %v622_v7 = vadd.f32 %v544_v29, %v470_v28  ;;  %v623_v52 = vadd.f32 %v545_v30, %v471_v40 }
 0x1c4   : > { %v542_v11 = vmul.f32 %v913_v33, %v537_v35  ;;  %v543_v50 = vmul.f32 %v914_v34, %v539_v36  ;;  %v566_v53 = vmul.f32 %v915_v0, %v562_v41  ;;  %v567_v57 = vmul.f32 %v916_v48, %v564_v5  ;;  %v926_v35 = vld [vmem:[%s1401_s2 + $0xd8] sm:$0xff] }
 0x1c5   : > { %v580_v37 = vpop.permute.xlu0 %579 }
 0x1c6   : > { %v584_v2 = vsel %vm583_vm12, %v1144_v6, %v580_v37  ;;  %v586_v44 = vsel %vm583_vm12, %v580_v37, %v1144_v6  ;;  %v560_v45 = vpop.permute.xlu1 %559  ;;  %v423_v6 = vld [vmem:[%s1401_s2 + $0x10] sm:$0xff]  ;;  %v547_v20 = vadd.f32 %v543_v50, %v521_v46 }
 0x1c7   : > { %v588_v54 = vmul.f32 %v919_v42, %v586_v44  ;;  %v589_v55 = vmul.f32 %v920_v43, %v584_v2  ;;  %v563_v15 = vsel %vm561_vm11, %v1142_v4, %v560_v45  ;;  %v565_v22 = vsel %vm561_vm11, %v560_v45, %v1142_v4 }
 0x1c8   : > { %v568_v29 = vmul.f32 %v917_v63, %v563_v15 }
 0x1c9   : > { %v428_v56 = vpop.permute.xlu0 %427  ;;  %v592_v25 = vadd.f32 %v588_v54, %v566_v53  ;;  %v593_v26 = vadd.f32 %v589_v55, %v567_v57 }
 0x1ca   : > { %v437_v58 = vsel %vm435_vm6, %v428_v56, %v1152_v14  ;;  %v439_v59 = vsel %vm435_vm6, %v1152_v14, %v428_v56  ;;  %v582_v61 = vpop.permute.xlu1 %581  ;;  %v546_v14 = vadd.f32 %v542_v11, %v520_v21 }
 0x1cb   : > { %v442_v1 = vmul.f32 %v439_v59, %v423_v6  ;;  %v443_v12 = vmul.f32 %v437_v58, %v424_v51  ;;  %v585_v17 = vsel %vm583_vm12, %v1146_v8, %v582_v61  ;;  %v587_v19 = vsel %vm583_vm12, %v582_v61, %v1146_v8  ;;  %v918_v8 = vld [vmem:[%s1401_s2 + $0xf8] sm:$0xff] }
 0x1cc   : > { %v590_v23 = vmul.f32 %v921_v3, %v587_v19  ;;  %v591_v60 = vmul.f32 %v922_v13, %v585_v17  ;;  %v569_v36 = vmul.f32 %v918_v8, %v565_v22 }
 0x1cd   : > { %v446_v27 = vadd.f32 %v442_v1, %v1201_v38  ;;  %v447_v28 = vadd.f32 %v443_v12, %v1204_v39  ;;  %v606_v4 = vpop.permute.xlu0 %605 }
 0x1ce   : > { %v610_v18 = vsel %vm609_vm13, %v1148_v9, %v606_v4  ;;  %v612_v30 = vsel %vm609_vm13, %v606_v4, %v1148_v9  ;;  %v608_v32 = vpop.permute.xlu1 %607  ;;  %v594_v37 = vadd.f32 %v590_v23, %v568_v29  ;;  %v595_v2 = vadd.f32 %v591_v60, %v569_v36 }
 0x1cf   : > { %v472_v33 = vadd.f32 %v468_v47, %v446_v27  ;;  %v473_v38 = vadd.f32 %v469_v49, %v447_v28  ;;  %v614_v34 = vmul.f32 %v923_v62, %v610_v18  ;;  %v615_v39 = vmul.f32 %v924_v24, %v612_v30 }
 0x1d0   : > { %v611_v40 = vsel %vm609_vm13, %v1150_v10, %v608_v32  ;;  %v613_v9 = vsel %vm609_vm13, %v608_v32, %v1150_v10 }
 0x1d1   : > { %v618_v0 = vadd.f32 %v614_v34, %v592_v25  ;;  %v619_v41 = vadd.f32 %v615_v39, %v593_v26  ;;  %v624_v42 = vadd.f32 %v546_v14, %v472_v33  ;;  %v616_v43 = vmul.f32 %v925_v31, %v611_v40 }
 0x1d2   : > { %v617_v44 = vmul.f32 %v926_v35, %v613_v9  ;;  %v625_v45 = vadd.f32 %v547_v20, %v473_v38 }
 0x1d3   : > { %v1368_v21 = vadd.f32 %v622_v7, %v618_v0  ;;  %v1370_v46 = vadd.f32 %v623_v52, %v619_v41  ;;  %v620_v47 = vadd.f32 %v616_v43, %v594_v37 }
 0x1d4   : > { %v621_v48 = vadd.f32 %v617_v44, %v595_v2 }
 0x1d5   : > { %v630_v5 = vand.u32 2147483647, %v1368_v21  ;;  %v631_v49 = vand.u32 2147483647, %v1370_v46  ;;  %v1374_v11 = vadd.f32 %v624_v42, %v620_v47  ;;  %vm722_vm14 = vcmp.ge.f32.partialorder %v1368_v21, 0.0 }
 0x1d6   : > { %v1376_v10 = vadd.f32 %v625_v45, %v621_v48  ;;  %vm723_vm15 = vcmp.ge.f32.partialorder %v1370_v46, 0.0 }
 0x1d7   : > { %v634_v16 = vmul.f32 0.70710677, %v630_v5  ;;  %v635_v50 = vmul.f32 0.70710677, %v631_v49  ;;  %v632_v6 = vand.u32 2147483647, %v1374_v11 }
 0x1d8   : > { %v633_v51 = vand.u32 2147483647, %v1376_v10  ;;  %vm724_vm0 = vcmp.ge.f32.partialorder %v1374_v11, 0.0  ;;  %vm725_vm1 = vcmp.ge.f32.partialorder %v1376_v10, 0.0 }
 0x1d9   : > { %v638_v7 = vmul.f32 0.3275911, %v634_v16  ;;  %v639_v53 = vmul.f32 0.3275911, %v635_v50  ;;  %v636_v52 = vmul.f32 0.70710677, %v632_v6 }
 0x1da   : > { %v637_v54 = vmul.f32 0.70710677, %v633_v51  ;;  %v698_v12 = vsub.f32 0.0, %v634_v16  ;;  %v699_v17 = vsub.f32 0.0, %v635_v50 }
 0x1db   : > { %v642_v55 = vadd.f32 1.0, %v638_v7  ;;  %v643_v56 = vadd.f32 1.0, %v639_v53  ;;  %v640_v3 = vmul.f32 0.3275911, %v636_v52  ;;  %v700_v26 = vsub.f32 0.0, %v636_v52 }
 0x1dc   : > { %v641_v57 = vmul.f32 0.3275911, %v637_v54  ;;  %v702_v24 = vmul.f32 %v698_v12, %v634_v16  ;;  %v703_v8 = vmul.f32 %v699_v17, %v635_v50  ;;  %v701_v28 = vsub.f32 0.0, %v637_v54 }
 0x1dd   : > { %968 = vrcp.f32 %v642_v55  ;;  %v644_v15 = vadd.f32 1.0, %v640_v3  ;;  %v704_v33 = vmul.f32 %v700_v26, %v636_v52 }
 0x1de   : > { %970 = vrcp.f32 %v643_v56  ;;  %v645_v58 = vadd.f32 1.0, %v641_v57  ;;  %v706_v31 = vmul.f32 1.442695, %v702_v24  ;;  %v708_v34 = vmul.f32 1.442695, %v703_v8 }
 0x1df   : > { %972 = vrcp.f32 %v644_v15  ;;  %v705_v39 = vmul.f32 %v701_v28, %v637_v54  ;;  %v710_v41 = vmul.f32 1.442695, %v704_v33 }
 0x1e0   : > { %974 = vrcp.f32 %v645_v58 }
 0x1e1   : > { %976 = vpow2.f32 %v706_v31  ;;  %v712_v2 = vmul.f32 1.442695, %v705_v39  ;;  %v734_v31 = vmul.f32 0.5, %v1368_v21  ;;  %v203_v21 = vld [vmem:[%s1402_s3] sm:$0xf] }
 0x1e2   : > { %978 = vpow2.f32 %v708_v34  ;;  %v736_v34 = vmul.f32 0.5, %v1374_v11 }
 0x1e3   : > { %980 = vpow2.f32 %v710_v41 }
 0x1e4   : > { %982 = vpow2.f32 %v712_v2 }
 0x1e7   : > { %v969_v59 = vpop.eup %968 }
 0x1e8   : > { %v971_v61 = vpop.eup %970  ;;  %v650_v63 = vmul.f32 %v969_v59, %v642_v55 }
 0x1e9   : > { %v651_v1 = vmul.f32 %v971_v61, %v643_v56  ;;  %v973_v19 = vpop.eup %972 }
 0x1ea   : > { %v654_v13 = vsub.f32 2.0, %v650_v63  ;;  %v975_v20 = vpop.eup %974  ;;  %v652_v23 = vmul.f32 %v973_v19, %v644_v15 }
 0x1eb   : > { %v655_v14 = vsub.f32 2.0, %v651_v1  ;;  %v653_v25 = vmul.f32 %v975_v20, %v645_v58  ;;  %v977_v15 = vpop.eup %976 }
 0x1ec   : > { %v658_v22 = vmul.f32 %v969_v59, %v654_v13  ;;  %v656_v27 = vsub.f32 2.0, %v652_v23 }
 0x1ed   : > { %v659_v62 = vmul.f32 %v971_v61, %v655_v14  ;;  %v657_v29 = vsub.f32 2.0, %v653_v25  ;;  %v979_v61 = vpop.eup %978 }
 0x1ee   : > { %v662_v4 = vmul.f32 1.0614054, %v658_v22  ;;  %v660_v18 = vmul.f32 %v973_v19, %v656_v27  ;;  %v981_v14 = vpop.eup %980 }
 0x1ef   : > { %v663_v60 = vmul.f32 1.0614054, %v659_v62  ;;  %v661_v32 = vmul.f32 %v975_v20, %v657_v29  ;;  %v983_v24 = vpop.eup %982 }
 0x1f0   : > { %v666_v30 = vadd.f32 -1.4531521, %v662_v4  ;;  %v664_v35 = vmul.f32 1.0614054, %v660_v18 }
 0x1f1   : > { %v667_v38 = vadd.f32 -1.4531521, %v663_v60  ;;  %v665_v37 = vmul.f32 1.0614054, %v661_v32 }
 0x1f2   : > { %v670_v36 = vmul.f32 %v666_v30, %v658_v22  ;;  %v668_v9 = vadd.f32 -1.4531521, %v664_v35 }
 0x1f3   : > { %v671_v40 = vmul.f32 %v667_v38, %v659_v62  ;;  %v669_v42 = vadd.f32 -1.4531521, %v665_v37 }
 0x1f4   : > { %v674_v0 = vadd.f32 1.4214138, %v670_v36  ;;  %v672_v44 = vmul.f32 %v668_v9, %v660_v18  ;;  %v737_v36 = vmul.f32 0.5, %v1376_v10 }
 0x1f5   : > { %v675_v43 = vadd.f32 1.4214138, %v671_v40  ;;  %v673_v47 = vmul.f32 %v669_v42, %v661_v32 }
 0x1f6   : > { %v678_v45 = vmul.f32 %v674_v0, %v658_v22  ;;  %v676_v5 = vadd.f32 1.4214138, %v672_v44 }
 0x1f7   : > { %v679_v48 = vmul.f32 %v675_v43, %v659_v62  ;;  %v677_v16 = vadd.f32 1.4214138, %v673_v47 }
 0x1f8   : > { %v682_v49 = vadd.f32 -0.28449672, %v678_v45  ;;  %v680_v6 = vmul.f32 %v676_v5, %v660_v18 }
 0x1f9   : > { %v683_v50 = vadd.f32 -0.28449672, %v679_v48  ;;  %v681_v7 = vmul.f32 %v677_v16, %v661_v32 }
 0x1fa   : > { %v686_v51 = vmul.f32 %v682_v49, %v658_v22  ;;  %v684_v52 = vadd.f32 -0.28449672, %v680_v6 }
 0x1fb   : > { %v687_v53 = vmul.f32 %v683_v50, %v659_v62  ;;  %v685_v55 = vadd.f32 -0.28449672, %v681_v7 }
 0x1fc   : > { %v690_v54 = vadd.f32 0.2548296, %v686_v51  ;;  %v688_v3 = vmul.f32 %v684_v52, %v660_v18 }
 0x1fd   : > { %v691_v56 = vadd.f32 0.2548296, %v687_v53  ;;  %v689_v58 = vmul.f32 %v685_v55, %v661_v32 }
 0x1fe   : > { %v694_v57 = vmul.f32 %v690_v54, %v658_v22  ;;  %v692_v63 = vadd.f32 0.2548296, %v688_v3 }
 0x1ff   : > { %v695_v59 = vmul.f32 %v691_v56, %v659_v62  ;;  %v693_v12 = vadd.f32 0.2548296, %v689_v58 }
 0x200   : > { %v714_v1 = vmul.f32 %v977_v15, %v694_v57  ;;  %v696_v17 = vmul.f32 %v692_v63, %v660_v18 }
 0x201   : > { %v715_v13 = vmul.f32 %v979_v61, %v695_v59  ;;  %v697_v20 = vmul.f32 %v693_v12, %v661_v32  ;;  %v735_v32 = vmul.f32 0.5, %v1370_v46 }
 0x202   : > { %v718_v19 = vsub.f32 1.0, %v714_v1  ;;  %v716_v25 = vmul.f32 %v981_v14, %v696_v17 }
 0x203   : > { %v719_v23 = vsub.f32 1.0, %v715_v13  ;;  %v717_v8 = vmul.f32 %v983_v24, %v697_v20 }
 0x204   : > { %v726_v26 = vsub.f32 0.0, %v718_v19  ;;  %v720_v22 = vsub.f32 1.0, %v716_v25 }
 0x205   : > { %v727_v27 = vsub.f32 0.0, %v719_v23  ;;  %v721_v28 = vsub.f32 1.0, %v717_v8 }
 0x206   : > { %v730_v62 = vsel %vm722_vm14, %v718_v19, %v726_v26  ;;  %v728_v18 = vsub.f32 0.0, %v720_v22 }
 0x207   : > { %v731_v4 = vsel %vm723_vm15, %v719_v23, %v727_v27  ;;  %v738_v29 = vadd.f32 1.0, %v730_v62  ;;  %v729_v30 = vsub.f32 0.0, %v721_v28 }
 0x208   : > { %v739_v60 = vadd.f32 1.0, %v731_v4  ;;  %v732_v33 = vsel %vm724_vm0, %v720_v22, %v728_v18 }
 0x209   : > { %v733_v38 = vsel %vm725_vm1, %v721_v28, %v729_v30  ;;  %v740_v39 = vadd.f32 1.0, %v732_v33  ;;  %v742_v35 = vmul.f32 %v738_v29, %v734_v31 }
 0x20a   : > { %v741_v37 = vadd.f32 1.0, %v733_v38  ;;  %v743_v40 = vmul.f32 %v739_v60, %v735_v32 }
 0x20b   : > { %v744_v9 = vmul.f32 %v740_v39, %v736_v34 }
 0x20c   : > { %v745_v0 = vmul.f32 %v741_v37, %v737_v36 }
 0x20d   : > { %v932_v41 = vpack.c.bf16 %v744_v9, %v742_v35 }
 0x20e   : > { %v930_v42 = vpack.c.bf16 %v745_v0, %v743_v40 }
 0x210   : > { %931 = vmatprep.subr.bf16.mxu1 %v930_v42 }
 0x211   : > { %933 = vmatpush1.bf16.msra.mxu1 %v932_v41 }
 0x214   : > { %927 = vmatmul.mubr.msk.f32.vlgmr.msra.gmra.mrb[0].mxu1 %vm746_vm2, %v203_v21 }
 0x2e7   : > { %v816_v46 = vpop.f32.mrb[0].mxu1 }
 0x2e8   : > { %v818_v11 = vpop.f32.mrb[1].mxu1 }
 0x2e9   : > { %v823_v10 = vcombine.low %v816_v46, %v818_v11 }
 0x2eb   : > { %825 = vst [vmem:[%s199_s16] sm:$0xff] %v823_v10 }
 0x2ec PF: > { %s14_s15 = sadd.s32 1, %s990_s15  }
 0x2ed   : > { %p11_p4 = scmp.ge.s32.totalorder %s14_s15, 4  }
 0x2ef   :  { %13 = sbr.rel (!%p11_p4) target bundleno = 1 (0x1), region = 74 }

</bundles_post_ra>
